<compile_context>
chip_gen: v7x
topology: tpu7x:2x2x1
jax: 0.10.0
libtpu: 0.0.40
codegen_flags: <defaults>
</compile_context>

<pallas_src>
import functools

import jax
import jax.numpy as jnp
from jax.experimental import pallas as pl
from jax.experimental.pallas import tpu as pltpu


# ----------------------------------------------------------------------------
# Fused multi-head attention kernel: one (batch, head) tile per grid step.
# ----------------------------------------------------------------------------
def _mha_kernel(x_ref, wq_ref, wk_ref, wv_ref, wo_ref, bo_ref, o_ref, acc_ref,
                *, scale, n_real):
    h = pl.program_id(1)

    @pl.when(h == 0)
    def _():
        acc_ref[...] = jnp.zeros_like(acc_ref)

    x = x_ref[...]                                              # (n_pad, dim) bf16
    # q/k/v projections for this head: bf16 MXU, f32 accumulate.
    q = jnp.dot(x, wq_ref[...], preferred_element_type=jnp.float32)   # (n_pad, dh)
    k = jnp.dot(x, wk_ref[...], preferred_element_type=jnp.float32)
    v = jnp.dot(x, wv_ref[...], preferred_element_type=jnp.float32)

    dots = jnp.dot(q.astype(jnp.bfloat16), k.astype(jnp.bfloat16).T,
                   preferred_element_type=jnp.float32) * scale        # (n_pad, n_pad)

    n_pad = dots.shape[-1]
    if n_real < n_pad:  # static: mask padded key columns so softmax is exact
        col = jax.lax.broadcasted_iota(jnp.int32, dots.shape, 1)
        dots = jnp.where(col < n_real, dots, -1e30)

    # max-subtracted softmax in f32; normalization via EUP approx reciprocal.
    m = jnp.max(dots, axis=-1, keepdims=True)
    p = jnp.exp(dots - m)
    denom = jnp.sum(p, axis=-1, keepdims=True)
    attn = p * pl.reciprocal(denom, approx=True)

    out_h = jnp.dot(attn.astype(jnp.bfloat16), v.astype(jnp.bfloat16),
                    preferred_element_type=jnp.float32)               # (n_pad, dh)

    # Accumulate this head's contribution to the output projection.
    acc_ref[...] += jnp.dot(out_h.astype(jnp.bfloat16), wo_ref[...],
                            preferred_element_type=jnp.float32)       # (n_pad, dim)

    @pl.when(h == pl.num_programs(1) - 1)
    def _():
        o_ref[...] = (acc_ref[...] + bo_ref[...]).astype(o_ref.dtype)


# ----------------------------------------------------------------------------
# Wrapper: weight layout prep + pallas_call
# ----------------------------------------------------------------------------
def attention_forward(x, wqkv, wo, bo, *, heads, dim_head):
    """x: (b, n, dim) f32; wqkv: (dim, 3*inner); wo: (inner, dim); bo: (dim,)."""
    b, n, dim = x.shape
    inner = heads * dim_head
    assert wqkv.shape == (dim, 3 * inner)
    assert wo.shape == (inner, dim)

    # Pad sequence to a sublane multiple of 8 (lane dim of the output is `dim`).
    n_pad = ((n + 7) // 8) * 8
    x_p = x if n_pad == n else jnp.pad(x, ((0, 0), (0, n_pad - n), (0, 0)))
    x_bf = x_p.astype(jnp.bfloat16)                     # cast once, halves DMA

    # Head-major per-head weight slabs: (heads, dim, dim_head) / (heads, dh, dim).
    def head_split(w):  # w: (dim, inner), column block h*dh:(h+1)*dh is head h
        return w.reshape(dim, heads, dim_head).transpose(1, 0, 2).astype(jnp.bfloat16)

    wq = head_split(wqkv[:, 0 * inner:1 * inner])
    wk = head_split(wqkv[:, 1 * inner:2 * inner])
    wv = head_split(wqkv[:, 2 * inner:3 * inner])
    wo_h = wo.reshape(heads, dim_head, dim).astype(jnp.bfloat16)
    bo2 = bo.reshape(1, dim).astype(jnp.float32)

    kern = functools.partial(_mha_kernel, scale=dim_head ** -0.5, n_real=n)

    out = pl.pallas_call(
        kern,
        grid=(b, heads),                                 # heads = reduction, last
        in_specs=[
            pl.BlockSpec((None, n_pad, dim), lambda bi, hi: (bi, 0, 0)),      # x
            pl.BlockSpec((None, dim, dim_head), lambda bi, hi: (hi, 0, 0)),   # Wq_h
            pl.BlockSpec((None, dim, dim_head), lambda bi, hi: (hi, 0, 0)),   # Wk_h
            pl.BlockSpec((None, dim, dim_head), lambda bi, hi: (hi, 0, 0)),   # Wv_h
            pl.BlockSpec((None, dim_head, dim), lambda bi, hi: (hi, 0, 0)),   # Wo_h
            pl.BlockSpec((1, dim), lambda bi, hi: (0, 0)),                    # bias
        ],
        out_specs=pl.BlockSpec((None, n_pad, dim), lambda bi, hi: (bi, 0, 0)),
        out_shape=jax.ShapeDtypeStruct((b, n_pad, dim), jnp.float32),
        scratch_shapes=[pltpu.VMEM((n_pad, dim), jnp.float32)],               # acc
        compiler_params=pltpu.CompilerParams(
            dimension_semantics=("parallel", "arbitrary"),
            vmem_limit_bytes=32 * 1024 * 1024),
    )(x_bf, wq, wk, wv, wo_h, bo2)

    return out[:, :n, :]


# ----------------------------------------------------------------------------
# Pure-JAX reference (matches the PyTorch module, dropout p=0)
# ----------------------------------------------------------------------------
def _attention_reference(x, wqkv, wo, bo, *, heads, dim_head):
    b, n, dim = x.shape
    inner = heads * dim_head
    qkv = x @ wqkv
    q, k, v = jnp.split(qkv, 3, axis=-1)

    def split_heads(t):  # 'b n (h d) -> b h n d'
        return t.reshape(b, n, heads, dim_head).transpose(0, 2, 1, 3)

    q, k, v = map(split_heads, (q, k, v))
    dots = jnp.einsum('bhnd,bhmd->bhnm', q, k) * (dim_head ** -0.5)
    attn = jax.nn.softmax(dots, axis=-1)
    out = jnp.einsum('bhnm,bhmd->bhnd', attn, v)
    out = out.transpose(0, 2, 1, 3).reshape(b, n, inner)     # 'b h n d -> b n (h d)'
    return out @ wo + bo


# ----------------------------------------------------------------------------
if __name__ == "__main__":
    # Small, lane-aligned shapes (dim multiple of 128 -> dense stores).
    B, N, DIM, HEADS, DIM_HEAD = 2, 128, 128, 4, 64
    INNER = HEADS * DIM_HEAD

    key = jax.random.PRNGKey(0)
    kx, kq, ko, kb = jax.random.split(key, 4)
    x = jax.random.normal(kx, (B, N, DIM), jnp.float32)
    wqkv = 0.05 * jax.random.normal(kq, (DIM, 3 * INNER), jnp.float32)  # to_qkv (no bias)
    wo = 0.05 * jax.random.normal(ko, (INNER, DIM), jnp.float32)        # to_out Linear
    bo = 0.05 * jax.random.normal(kb, (DIM,), jnp.float32)

    out = attention_forward(x, wqkv, wo, bo, heads=HEADS, dim_head=DIM_HEAD)
    out = jax.block_until_ready(out)

    ref = _attention_reference(x, wqkv, wo, bo, heads=HEADS, dim_head=DIM_HEAD)
    assert out.shape == (B, N, DIM), out.shape
    assert bool(jnp.isfinite(out).all())
    max_err = float(jnp.max(jnp.abs(out - ref)))
    # bf16 MXU operands + approx reciprocal vs f32 reference -> loose tolerance.
    assert max_err < 5e-2, f"max abs err {max_err}"
    print("KERNEL_OK")
</pallas_src>

<mosaic_0001>
module attributes {stable_mosaic.version = 11 : i64} {
  func.func @_mha_kernel(%arg0: i32, %arg1: i32, %arg2: memref<1x128x128xbf16, #tpu.memory_space<vmem>>, %arg3: memref<1x128x64xbf16, #tpu.memory_space<vmem>>, %arg4: memref<1x128x64xbf16, #tpu.memory_space<vmem>>, %arg5: memref<1x128x64xbf16, #tpu.memory_space<vmem>>, %arg6: memref<1x64x128xbf16, #tpu.memory_space<vmem>>, %arg7: memref<1x128xf32, #tpu.memory_space<vmem>>, %arg8: memref<1x128x128xf32, #tpu.memory_space<vmem>>, %arg9: memref<128x128xf32, #tpu.memory_space<vmem>>) attributes {dimension_semantics = [#tpu.dimension_semantics<parallel>, #tpu.dimension_semantics<arbitrary>], iteration_bounds = array<i64: 2, 4>, scalar_prefetch = 0 : i64, scratch_operands = 1 : i64, tpu.core_type = #tpu.core_type<tc>, window_params = [{transform_indices = @transform_0, window_bounds = array<i64: 1, 128, 128>}, {transform_indices = @transform_1, window_bounds = array<i64: 1, 128, 64>}, {transform_indices = @transform_2, window_bounds = array<i64: 1, 128, 64>}, {transform_indices = @transform_3, window_bounds = array<i64: 1, 128, 64>}, {transform_indices = @transform_4, window_bounds = array<i64: 1, 64, 128>}, {pipeline_mode = #tpu.pipeline_mode<synchronous>, transform_indices = @transform_5, window_bounds = array<i64: 1, 128>}, {transform_indices = @transform_6, window_bounds = array<i64: 1, 128, 128>}]} {
    %c0_i32 = arith.constant 0 : i32
    %0 = arith.cmpi eq, %arg1, %c0_i32 : i32
    %1 = arith.extui %0 : i1 to i32
    %c0_i32_0 = arith.constant 0 : i32
    %2 = arith.cmpi ne, %1, %c0_i32_0 : i32
    scf.if %2 {
      %cst_28 = arith.constant 0.000000e+00 : f32
      %43 = vector.broadcast %cst_28 : f32 to vector<128x128xf32>
      %c0_29 = arith.constant 0 : index
      %c0_30 = arith.constant 0 : index
      %44 = vector.load %arg9[%c0_29, %c0_30] : memref<128x128xf32, #tpu.memory_space<vmem>>, vector<128x128xf32>
      tpu.vector_store %arg9[%c0_29, %c0_30], %43 {strides = array<i32>} : memref<128x128xf32, #tpu.memory_space<vmem>>, vector<128x128xf32>,
    } else {
    }
    %c0 = arith.constant 0 : index
    %c0_1 = arith.constant 0 : index
    %c0_2 = arith.constant 0 : index
    %3 = vector.load %arg2[%c0, %c0_1, %c0_2] : memref<1x128x128xbf16, #tpu.memory_space<vmem>>, vector<1x128x128xbf16>
    %4 = vector.shape_cast %3 : vector<1x128x128xbf16> to vector<128x128xbf16>
    %c0_3 = arith.constant 0 : index
    %c0_4 = arith.constant 0 : index
    %c0_5 = arith.constant 0 : index
    %5 = vector.load %arg3[%c0_3, %c0_4, %c0_5] : memref<1x128x64xbf16, #tpu.memory_space<vmem>>, vector<1x128x64xbf16>
    %6 = vector.shape_cast %5 : vector<1x128x64xbf16> to vector<128x64xbf16>
    %cst = arith.constant dense<0.000000e+00> : vector<128x64xf32>
    %7 = tpu.matmul %4, %6, %cst {dimension_numbers = #tpu.dot_dimension_numbers<[1], [0], [0], [1], [0, 0, 1, 1], [], []>} : vector<128x128xbf16>, vector<128x64xbf16>, vector<128x64xf32> -> vector<128x64xf32>
    %c0_6 = arith.constant 0 : index
    %c0_7 = arith.constant 0 : index
    %c0_8 = arith.constant 0 : index
    %8 = vector.load %arg4[%c0_6, %c0_7, %c0_8] : memref<1x128x64xbf16, #tpu.memory_space<vmem>>, vector<1x128x64xbf16>
    %9 = vector.shape_cast %8 : vector<1x128x64xbf16> to vector<128x64xbf16>
    %cst_9 = arith.constant dense<0.000000e+00> : vector<128x64xf32>
    %10 = tpu.matmul %4, %9, %cst_9 {dimension_numbers = #tpu.dot_dimension_numbers<[1], [0], [0], [1], [0, 0, 1, 1], [], []>} : vector<128x128xbf16>, vector<128x64xbf16>, vector<128x64xf32> -> vector<128x64xf32>
    %c0_10 = arith.constant 0 : index
    %c0_11 = arith.constant 0 : index
    %c0_12 = arith.constant 0 : index
    %11 = vector.load %arg5[%c0_10, %c0_11, %c0_12] : memref<1x128x64xbf16, #tpu.memory_space<vmem>>, vector<1x128x64xbf16>
    %12 = vector.shape_cast %11 : vector<1x128x64xbf16> to vector<128x64xbf16>
    %cst_13 = arith.constant dense<0.000000e+00> : vector<128x64xf32>
    %13 = tpu.matmul %4, %12, %cst_13 {dimension_numbers = #tpu.dot_dimension_numbers<[1], [0], [0], [1], [0, 0, 1, 1], [], []>} : vector<128x128xbf16>, vector<128x64xbf16>, vector<128x64xf32> -> vector<128x64xf32>
    %14 = arith.truncf %7 : vector<128x64xf32> to vector<128x64xbf16>
    %15 = arith.truncf %10 : vector<128x64xf32> to vector<128x64xbf16>
    %16 = tpu.transpose %15, [1, 0] : vector<128x64xbf16> -> vector<64x128xbf16>
    %cst_14 = arith.constant dense<0.000000e+00> : vector<128x128xf32>
    %17 = tpu.matmul %14, %16, %cst_14 {dimension_numbers = #tpu.dot_dimension_numbers<[1], [0], [0], [1], [0, 0, 1, 1], [], []>} : vector<128x64xbf16>, vector<64x128xbf16>, vector<128x128xf32> -> vector<128x128xf32>
    %cst_15 = arith.constant 1.250000e-01 : f32
    %18 = vector.broadcast %cst_15 : f32 to vector<128x128xf32>
    %19 = arith.mulf %17, %18 : vector<128x128xf32>
    %cst_16 = arith.constant dense<0xFF800000> : vector<128xf32>
    %20 = vector.multi_reduction <maximumf>, %19, %cst_16 [1] : vector<128x128xf32> to vector<128xf32>
    %21 = vector.shape_cast %20 : vector<128xf32> to vector<128x1xf32>
    %22 = vector.broadcast %21 : vector<128x1xf32> to vector<128x128xf32>
    %23 = arith.subf %19, %22 : vector<128x128xf32>
    %24 = math.exp %23 : vector<128x128xf32>
    %cst_17 = arith.constant dense<0.000000e+00> : vector<128xf32>
    %25 = vector.multi_reduction <add>, %24, %cst_17 [1] : vector<128x128xf32> to vector<128xf32>
    %26 = vector.shape_cast %25 : vector<128xf32> to vector<128x1xf32>
    %27 = tpu.reciprocal %26 {approx = true} : vector<128x1xf32> -> vector<128x1xf32>
    %28 = vector.broadcast %27 : vector<128x1xf32> to vector<128x128xf32>
    %29 = arith.mulf %24, %28 : vector<128x128xf32>
    %30 = arith.truncf %29 : vector<128x128xf32> to vector<128x128xbf16>
    %31 = arith.truncf %13 : vector<128x64xf32> to vector<128x64xbf16>
    %cst_18 = arith.constant dense<0.000000e+00> : vector<128x64xf32>
    %32 = tpu.matmul %30, %31, %cst_18 {dimension_numbers = #tpu.dot_dimension_numbers<[1], [0], [0], [1], [0, 0, 1, 1], [], []>} : vector<128x128xbf16>, vector<128x64xbf16>, vector<128x64xf32> -> vector<128x64xf32>
    %c0_19 = arith.constant 0 : index
    %c0_20 = arith.constant 0 : index
    %33 = vector.load %arg9[%c0_19, %c0_20] : memref<128x128xf32, #tpu.memory_space<vmem>>, vector<128x128xf32>
    %34 = arith.truncf %32 : vector<128x64xf32> to vector<128x64xbf16>
    %c0_21 = arith.constant 0 : index
    %c0_22 = arith.constant 0 : index
    %c0_23 = arith.constant 0 : index
    %35 = vector.load %arg6[%c0_21, %c0_22, %c0_23] : memref<1x64x128xbf16, #tpu.memory_space<vmem>>, vector<1x64x128xbf16>
    %36 = vector.shape_cast %35 : vector<1x64x128xbf16> to vector<64x128xbf16>
    %cst_24 = arith.constant dense<0.000000e+00> : vector<128x128xf32>
    %37 = tpu.matmul %34, %36, %cst_24 {dimension_numbers = #tpu.dot_dimension_numbers<[1], [0], [0], [1], [0, 0, 1, 1], [], []>} : vector<128x64xbf16>, vector<64x128xbf16>, vector<128x128xf32> -> vector<128x128xf32>
    %38 = arith.addf %33, %37 : vector<128x128xf32>
    %c0_25 = arith.constant 0 : index
    %c0_26 = arith.constant 0 : index
    %39 = vector.load %arg9[%c0_25, %c0_26] : memref<128x128xf32, #tpu.memory_space<vmem>>, vector<128x128xf32>
    tpu.vector_store %arg9[%c0_25, %c0_26], %38 {strides = array<i32>} : memref<128x128xf32, #tpu.memory_space<vmem>>, vector<128x128xf32>,
    %c3_i32 = arith.constant 3 : i32
    %40 = arith.cmpi eq, %arg1, %c3_i32 : i32
    %41 = arith.extui %40 : i1 to i32
    %c0_i32_27 = arith.constant 0 : i32
    %42 = arith.cmpi ne, %41, %c0_i32_27 : i32
    scf.if %42 {
      %c0_28 = arith.constant 0 : index
      %c0_29 = arith.constant 0 : index
      %43 = vector.load %arg9[%c0_28, %c0_29] : memref<128x128xf32, #tpu.memory_space<vmem>>, vector<128x128xf32>
      %c0_30 = arith.constant 0 : index
      %c0_31 = arith.constant 0 : index
      %44 = vector.load %arg7[%c0_30, %c0_31] : memref<1x128xf32, #tpu.memory_space<vmem>>, vector<1x128xf32>
      %45 = vector.broadcast %44 : vector<1x128xf32> to vector<128x128xf32>
      %46 = arith.addf %43, %45 : vector<128x128xf32>
      %c0_32 = arith.constant 0 : index
      %c0_33 = arith.constant 0 : index
      %c0_34 = arith.constant 0 : index
      %47 = vector.load %arg8[%c0_32, %c0_33, %c0_34] : memref<1x128x128xf32, #tpu.memory_space<vmem>>, vector<1x128x128xf32>
      %48 = vector.shape_cast %47 : vector<1x128x128xf32> to vector<128x128xf32>
      %49 = vector.shape_cast %46 : vector<128x128xf32> to vector<1x128x128xf32>
      tpu.vector_store %arg8[%c0_32, %c0_33, %c0_34], %49 {strides = array<i32>} : memref<1x128x128xf32, #tpu.memory_space<vmem>>, vector<1x128x128xf32>,
    } else {
    }
    return
  }
  func.func @transform_0(%arg0: i32, %arg1: i32) -> (i32, i32, i32) {
    %c0_i32 = arith.constant 0 : i32
    %c0_i32_0 = arith.constant 0 : i32
    %c0_i32_1 = arith.constant 0 : i32
    return %arg0, %c0_i32, %c0_i32_0 : i32, i32, i32
  }
  func.func @transform_1(%arg0: i32, %arg1: i32) -> (i32, i32, i32) {
    %c0_i32 = arith.constant 0 : i32
    %c0_i32_0 = arith.constant 0 : i32
    %c0_i32_1 = arith.constant 0 : i32
    return %arg1, %c0_i32, %c0_i32_0 : i32, i32, i32
  }
  func.func @transform_2(%arg0: i32, %arg1: i32) -> (i32, i32, i32) {
    %c0_i32 = arith.constant 0 : i32
    %c0_i32_0 = arith.constant 0 : i32
    %c0_i32_1 = arith.constant 0 : i32
    return %arg1, %c0_i32, %c0_i32_0 : i32, i32, i32
  }
  func.func @transform_3(%arg0: i32, %arg1: i32) -> (i32, i32, i32) {
    %c0_i32 = arith.constant 0 : i32
    %c0_i32_0 = arith.constant 0 : i32
    %c0_i32_1 = arith.constant 0 : i32
    return %arg1, %c0_i32, %c0_i32_0 : i32, i32, i32
  }
  func.func @transform_4(%arg0: i32, %arg1: i32) -> (i32, i32, i32) {
    %c0_i32 = arith.constant 0 : i32
    %c0_i32_0 = arith.constant 0 : i32
    %c0_i32_1 = arith.constant 0 : i32
    return %arg1, %c0_i32, %c0_i32_0 : i32, i32, i32
  }
  func.func @transform_5(%arg0: i32, %arg1: i32) -> (i32, i32) {
    %c0_i32 = arith.constant 0 : i32
    %c0_i32_0 = arith.constant 0 : i32
    %c0_i32_1 = arith.constant 0 : i32
    return %c0_i32, %c0_i32_0 : i32, i32
  }
  func.func @transform_6(%arg0: i32, %arg1: i32) -> (i32, i32, i32) {
    %c0_i32 = arith.constant 0 : i32
    %c0_i32_0 = arith.constant 0 : i32
    %c0_i32_1 = arith.constant 0 : i32
    return %arg0, %c0_i32, %c0_i32_0 : i32, i32, i32
  }
}

</mosaic_0001>

<bundles_post_ra>
// kernel: tpu_custom_call.1
= control target key start
LH: loop header
LB: loop body
LE: loop exit
PB: predicated region body
PF: predicated region fallthrough
CT: control target
= control target key end

     0   :  { %s2833_s0 = inlined_call_operand.vmem [shape: bf16[2,128,128], index: 0, kind: input, shape index: {}]   ;;  %s2834_s1 = inlined_call_operand.vmem [shape: bf16[4,128,64], index: 1, kind: input, shape index: {}]   ;;  %s2835_s2 = inlined_call_operand.vmem [shape: bf16[4,128,64], index: 2, kind: input, shape index: {}]   ;;  %s2836_s3 = inlined_call_operand.vmem [shape: bf16[4,128,64], index: 3, kind: input, shape index: {}]   ;;  %s2837_s4 = inlined_call_operand.vmem [shape: bf16[4,64,128], index: 4, kind: input, shape index: {}]   ;;  %s2838_s5 = inlined_call_operand.vmem [shape: f32[1,128], index: 5, kind: input, shape index: {}]   ;;  %s2839_s6 = inlined_call_operand.hbm [shape: f32[2,128,128], index: 6, kind: output, shape index: {}]  }
   0x1   :  { %2845 = sst [smem:[#allocation12_spill]] %s2833_s0 }
   0x2   :  { %11 = vsyncpa [#allocation4], 0 }
   0x3   :  { %13 = vsyncpa [#allocation4 + $0x1], 0  ;;  %s2439_s21 = smov 0   ;;  %s2441_s22 = smov 0  }
   0x4   :  { %s2443_s23 = smov 0   ;;  %s2445_s24 = smov 0  }
   0x5   :  { %s2447_s25 = smov 0   ;;  %s2449_s26 = smov 0  }
   0x6   :  { %s2451_s27 = smov 0   ;;  %s2453_s28 = smov 0  }
   0x7 LB: > { %2846 = sst [smem:[#allocation6_spill]] %s2378_s23  ;;  %s1748_s29 = sadd.s32 4294967295, %s2398_s28   ;;  %s2398_s28 = sphi %s2453_s28, %s19_s28   ;;  %s2394_s27 = sphi %s2451_s27, %s2864_s27   ;;  %s2390_s26 = sphi %s2449_s26, %s2860_s26   ;;  %s2386_s25 = sphi %s2447_s25, %s2859_s25   ;;  %s2382_s24 = sphi %s2445_s24, %s2858_s24   ;;  %s2378_s23 = sphi %s2443_s23, %s2857_s23   ;;  %s2374_s22 = sphi %s2441_s22, %s2863_s22   ;;  %s2370_s21 = sphi %s2439_s21, %s2862_s21  }
   0x8   : > { %2847 = sst [smem:[#allocation7_spill]] %s2390_s26  ;;  %s1749_s30 = sadd.s32 4294967294, %s2398_s28  }
   0x9   : > { %2848 = sst [smem:[#allocation8_spill]] %s2394_s27  ;;  %s28_s7 = sadd.s32 1, %s2390_s26 }
   0xa   : > { %p29_p0 = scmp.ge.s32.totalorder %s28_s7, 4  ;;  %s31_s8 = sadd.s32 1, %s2394_s27 }
   0xb   : > { %p199_p1 = scmp.ne.s32.totalorder %s2378_s23, %s2374_s22  ;;  %p200_p2 = scmp.eq.s32.totalorder %s1748_s29, 7 }
   0xc   : > { %s2866_s7 = smov (%p29_p0, %s28_s7), 0  ;;  %s2868_s8 = smov (!%p29_p0, %s31_s8), %s2394_s27 }
   0xd   : > { %2849 = sst [smem:[#allocation9_spill]] %s2866_s7  ;;  %p2488_p3 = por %p200_p2, %p199_p1 }
   0xe   : > { %p205_p4 = scmp.ne.s32.totalorder %s2374_s22, %s2370_s21  ;;  %p33_p5 = scmp.ge.s32.totalorder %s2868_s8, 2 }
   0xf   : > { %p206_p6 = scmp.eq.s32.totalorder %s1749_s30, 7  ;;  %p1752_p7 = scmp.ge.s32.totalorder %s2398_s28, 1 }
  0x10   : > { %p267_p8 = scmp.lt.s32.totalorder %s2398_s28, 9  ;;  %s2870_s8 = smov (%p33_p5, %s2868_s8), 0 }
  0x11   : > { %2851 = sst [smem:[#allocation10_spill]] %s2870_s8  ;;  %p2498_p9 = por %p206_p6, %p205_p4 }
  0x12   : > { %p268_p10 = pnand %p1752_p7, %p267_p8  ;;  %s186_s11 = ssub.s32 %s2394_s27, %s2870_s8 }
  0x13   : > { %s189_s12 = sadd.s32 1, %s2378_s23  ;;  %p187_p11 = scmp.eq.s32.totalorder %s186_s11, 0 }
  0x14   : > { %271 = sbr.rel (%p268_p10) target bundleno = 1385 (0x569), region = 44  ;;  %s2843_s14 = sand.u32 (!%p268_p10), 1, %s2374_s22  }
  0x15   : > { %s2506_s13 = scalar_select %p187_p11, %s2378_s23, %s189_s12  }
  0x16   : > { %p317_p12 = scmp.lt.s32.totalorder (!%p268_p10), %s2386_s25, 1  ;;  %s1753_s15 = sshll.u32 (!%p268_p10), %s2843_s14, 7 }
  0x17   : > { %2853 = sst [smem:[#allocation11_spill]] %s2506_s13  ;;  %p322_p13 = scmp.lt.s32.totalorder (!%p268_p10), %s2382_s24, 3 }
  0x18   : > { %s2854_s0 = sld [smem:[#allocation12_spill]] (!%p268_p10)  ;;  %p1764_p0 = scmp.ne.s32.totalorder (!%p268_p10), %s2382_s24, 0 }
  0x1b   : > { %s318_s16 = scalar_select %p317_p12, %s2386_s25, 1 }
  0x1c   : > { %s323_s17 = scalar_select %p322_p13, %s2382_s24, 3 }
  0x1d   : > { %s1824_s18 = sshll.u32 %s318_s16, 6  ;;  %346 = sbr.rel (%p1764_p0) target bundleno = 38 (0x26), region = 48  ;;  %v2400_v0 = vmov (!%p1764_p0), 0.0  }
  0x1e   : > { %s2518_s29 = scalar_lea.vmem %s2854_s0, %s1824_s18  ;;  %s1825_s30 = sshll.u32 %s323_s17, 6  ;;  %347 = vst [vmem:[#allocation2] sm:$0xff] (!%p1764_p0), %v2400_v0  ;;  %348 = vst [vmem:[#allocation2 + $0x8] sm:$0xff] (!%p1764_p0), %v2400_v0 }
  0x1f   : > { %s2523_s8 = scalar_lea.vmem %s2834_s1, %s1825_s30  ;;  %s2528_s26 = scalar_lea.vmem %s2835_s2, %s1825_s30  ;;  %349 = vst [vmem:[#allocation2 + $0x10] sm:$0xff] (!%p1764_p0), %v2400_v0  ;;  %350 = vst [vmem:[#allocation2 + $0x18] sm:$0xff] (!%p1764_p0), %v2400_v0 }
  0x20   : > { %s2533_s16 = scalar_lea.vmem %s2836_s3, %s1825_s30  ;;  %s1828_s23 = sshll.u32 %s323_s17, 5  ;;  %351 = vst [vmem:[#allocation2 + $0x20] sm:$0xff] (!%p1764_p0), %v2400_v0  ;;  %352 = vst [vmem:[#allocation2 + $0x28] sm:$0xff] (!%p1764_p0), %v2400_v0 }
  0x21   : > { %s2538_s20 = scalar_lea.vmem %s2837_s4, %s1828_s23  ;;  %s2540_s0 = scalar_lea.vmem [#allocation3], %s1753_s15  ;;  %353 = vst [vmem:[#allocation2 + $0x30] sm:$0xff] (!%p1764_p0), %v2400_v0  ;;  %354 = vst [vmem:[#allocation2 + $0x38] sm:$0xff] (!%p1764_p0), %v2400_v0 }
  0x22   : > { %355 = vst [vmem:[#allocation2 + $0x40] sm:$0xff] (!%p1764_p0), %v2400_v0  ;;  %356 = vst [vmem:[#allocation2 + $0x48] sm:$0xff] (!%p1764_p0), %v2400_v0 }
  0x23   : > { %357 = vst [vmem:[#allocation2 + $0x50] sm:$0xff] (!%p1764_p0), %v2400_v0  ;;  %358 = vst [vmem:[#allocation2 + $0x58] sm:$0xff] (!%p1764_p0), %v2400_v0 }
  0x24   : > { %359 = vst [vmem:[#allocation2 + $0x60] sm:$0xff] %v2400_v0  ;;  %360 = vst [vmem:[#allocation2 + $0x68] sm:$0xff] %v2400_v0 }
  0x25   : > { %361 = vst [vmem:[#allocation2 + $0x70] sm:$0xff] %v2400_v0  ;;  %362 = vst [vmem:[#allocation2 + $0x78] sm:$0xff] %v2400_v0 }
  0x26 PF: > { %v2204_v1 = vld [vmem:[%s2528_s26] sm:$0xff]   ;;  %v2205_v2 = vld [vmem:[%s2528_s26 + $0x8] sm:$0xff]   ;;  %v2206_v3 = vld [vmem:[%s2528_s26 + $0x10] sm:$0xff]   ;;  %vm926_vm0 = vcmask 523264   ;;  %p1817_p1 = scmp.ne.s32.totalorder %s2382_s24, 3 }
  0x27   : > { %1954 = vmatprep.subr.bf16.mxu1 %v2204_v1  ;;  %v2207_v4 = vld [vmem:[%s2528_s26 + $0x18] sm:$0xff]   ;;  %v2212_v5 = vld [vmem:[%s2518_s29] sm:$0xff]   ;;  %v2209_v8 = vld [vmem:[%s2528_s26 + $0x28] sm:$0xff]  }
  0x28   : > { %1955 = vmatpush3.bf16.msra.mxu1 %v2204_v1  ;;  %1970 = vmatprep.mubr.bf16.mxu1 %v2212_v5  ;;  %v2208_v6 = vld [vmem:[%s2528_s26 + $0x20] sm:$0xff]   ;;  %v2219_v9 = vld [vmem:[%s2523_s8 + $0x8] sm:$0xff]   ;;  %v2220_v10 = vld [vmem:[%s2523_s8 + $0x10] sm:$0xff]  }
  0x29   : > { %1956 = vmatprep.subr.bf16.mxu1 %v2205_v2  ;;  %1938 = vmatprep.mubr.bf16.mxu0 %v2212_v5  ;;  %v2216_v7 = vld [vmem:[%s2523_s8] sm:$0xff]   ;;  %v2210_v11 = vld [vmem:[%s2528_s26 + $0x30] sm:$0xff]   ;;  %v2221_v12 = vld [vmem:[%s2523_s8 + $0x18] sm:$0xff]  }
  0x2a   : > { %1922 = vmatprep.subr.bf16.mxu0 %v2216_v7  ;;  %v2211_v13 = vld [vmem:[%s2528_s26 + $0x38] sm:$0xff]   ;;  %v2222_v14 = vld [vmem:[%s2523_s8 + $0x20] sm:$0xff]   ;;  %v2225_v15 = vld [vmem:[%s2523_s8 + $0x28] sm:$0xff]  }
  0x2b   : > { %1923 = vmatpush3.bf16.msra.mxu0 %v2216_v7  ;;  %v2559_v16 = vld [vmem:[%s2518_s29 + $0x8] sm:$0xff]   ;;  %v2562_v17 = vld [vmem:[%s2518_s29 + $0x10] sm:$0xff]   ;;  %v2227_v19 = vld [vmem:[%s2523_s8 + $0x38] sm:$0xff]  }
  0x2c   : > { %1957 = vmatpush3.bf16.msra.mxu1 %v2205_v2  ;;  %1924 = vmatprep.subr.bf16.mxu0 %v2219_v9  ;;  %v2226_v18 = vld [vmem:[%s2523_s8 + $0x30] sm:$0xff]   ;;  %v2569_v20 = vld [vmem:[%s2518_s29 + $0x18] sm:$0xff]   ;;  %v2572_v21 = vld [vmem:[%s2518_s29 + $0x20] sm:$0xff]  }
  0x2d   : > { %1958 = vmatprep.subr.bf16.mxu1 %v2206_v3  ;;  %v2577_v22 = vld [vmem:[%s2518_s29 + $0x28] sm:$0xff]   ;;  %v2581_v23 = vld [vmem:[%s2518_s29 + $0x30] sm:$0xff]   ;;  %v2587_v24 = vld [vmem:[%s2518_s29 + $0x38] sm:$0xff]  }
  0x2f   : > { %1925 = vmatpush3.bf16.msra.mxu0 %v2219_v9 }
  0x30   : > { %1959 = vmatpush3.bf16.msra.mxu1 %v2206_v3  ;;  %1926 = vmatprep.subr.bf16.mxu0 %v2220_v10 }
  0x31   : > { %1960 = vmatprep.subr.bf16.mxu1 %v2207_v4 }
  0x33   : > { %1927 = vmatpush3.bf16.msra.mxu0 %v2220_v10 }
  0x34   : > { %1961 = vmatpush3.bf16.msra.mxu1 %v2207_v4  ;;  %1928 = vmatprep.subr.bf16.mxu0 %v2221_v12 }
  0x35   : > { %1962 = vmatprep.subr.bf16.mxu1 %v2208_v6 }
  0x37   : > { %1929 = vmatpush3.bf16.msra.mxu0 %v2221_v12 }
  0x38   : > { %1963 = vmatpush3.bf16.msra.mxu1 %v2208_v6  ;;  %1930 = vmatprep.subr.bf16.mxu0 %v2222_v14 }
  0x39   : > { %1964 = vmatprep.subr.bf16.mxu1 %v2209_v8 }
  0x3b   : > { %1931 = vmatpush3.bf16.msra.mxu0 %v2222_v14 }
  0x3c   : > { %1965 = vmatpush3.bf16.msra.mxu1 %v2209_v8  ;;  %1932 = vmatprep.subr.bf16.mxu0 %v2225_v15 }
  0x3d   : > { %1966 = vmatprep.subr.bf16.mxu1 %v2210_v11 }
  0x3f   : > { %1933 = vmatpush3.bf16.msra.mxu0 %v2225_v15 }
  0x40   : > { %1967 = vmatpush3.bf16.msra.mxu1 %v2210_v11  ;;  %1934 = vmatprep.subr.bf16.mxu0 %v2226_v18 }
  0x41   : > { %1968 = vmatprep.subr.bf16.mxu1 %v2211_v13 }
  0x43   : > { %1935 = vmatpush3.bf16.msra.mxu0 %v2226_v18 }
  0x44   : > { %1969 = vmatpush3.bf16.msra.mxu1 %v2211_v13  ;;  %1936 = vmatprep.subr.bf16.mxu0 %v2227_v19 }
  0x47   : > { %1971 = vmatmul.mubr.bf16.vlgmr.msra.gmra.mrb[0].mxu1 %v2559_v16  ;;  %1937 = vmatpush3.bf16.msra.mxu0 %v2227_v19  ;;  %v2228_v19 = vld [vmem:[%s2533_s16] sm:$0xff]  }
  0x48   : > { %1974 = vmatprep.mubr.bf16.mxu1 %v2562_v17  ;;  %1986 = vmatprep.subr.bf16.mxu0 %v2228_v19 }
  0x4a   : > { %1939 = vmatmul.mubr.bf16.vlgmr.msra.gmra.mrb[0].mxu0 %v2559_v16 }
  0x4b   : > { %1942 = vmatprep.mubr.bf16.mxu0 %v2562_v17  ;;  %1987 = vmatpush3.bf16.msra.mxu0 %v2228_v19 }
  0x4f   : > { %1975 = vmatmul.mubr.bf16.gmra.mrb[4].mxu1 %v2569_v20 }
  0x50   : > { %1978 = vmatprep.mubr.bf16.mxu1 %v2572_v21 }
  0x52   : > { %1943 = vmatmul.mubr.bf16.gmra.mrb[4].mxu0 %v2569_v20 }
  0x53   : > { %1946 = vmatprep.mubr.bf16.mxu0 %v2572_v21 }
  0x57   : > { %1979 = vmatmul.mubr.bf16.gmra.mrb[8].mxu1 %v2577_v22 }
  0x58   : > { %1982 = vmatprep.mubr.bf16.mxu1 %v2581_v23 }
  0x5a   : > { %1947 = vmatmul.mubr.bf16.gmra.mrb[8].mxu0 %v2577_v22 }
  0x5b   : > { %1950 = vmatprep.mubr.bf16.mxu0 %v2581_v23 }
  0x5f   : > { %1983 = vmatmul.mubr.bf16.gmra.mrb[12].mxu1 %v2587_v24 }
  0x62   : > { %1951 = vmatmul.mubr.bf16.gmra.mrb[12].mxu0 %v2587_v24 }
  0x63   : > { %2002 = vmatprep.mubr.bf16.mxu0 %v2212_v5 }
 0x11a   : > { %v1972_v25 = vpop.f32.mrb[0].mxu1 }
 0x11b   : > { %v686_v26 = vpop.f32.mrb[1].mxu1 }
 0x11c   : > { %v1973_v27 = vpop.f32.mrb[2].mxu1 }
 0x11d   : > { %v919_v28 = vpack.c.bf16 %v1973_v27, %v1972_v25  ;;  %v689_v29 = vpop.f32.mrb[3].mxu1  ;;  %v1940_v38 = vpop.f32.mrb[0].mxu0  ;;  %v2229_v25 = vld [vmem:[%s2533_s16 + $0x8] sm:$0xff]   ;;  %v2231_v27 = vld [vmem:[%s2533_s16 + $0x18] sm:$0xff]  }
 0x11e   : > { %v918_v30 = vpack.c.bf16 %v689_v29, %v686_v26  ;;  %v525_v39 = vpop.f32.mrb[1].mxu0  ;;  %1988 = vmatprep.subr.bf16.mxu0 %v2229_v25  ;;  %v2230_v26 = vld [vmem:[%s2533_s16 + $0x10] sm:$0xff]   ;;  %v2233_v29 = vld [vmem:[%s2533_s16 + $0x28] sm:$0xff]  }
 0x11f   : > { %v955_v40 = vsel %vm926_vm0, %v919_v28, 0  ;;  %v1941_v41 = vpop.f32.mrb[2].mxu0  ;;  %1989 = vmatpush3.bf16.msra.mxu0 %v2229_v25 }
 0x120   : > { %v952_v31 = vsel %vm926_vm0, %v918_v30, 0  ;;  %2122 = vmatprep.subr.msk.bf16.mxu1 %vm926_vm0, %v918_v30  ;;  %v911_v42 = vpack.c.bf16 %v1941_v41, %v1940_v38  ;;  %v528_v43 = vpop.f32.mrb[3].mxu0  ;;  %1990 = vmatprep.subr.bf16.mxu0 %v2230_v26  ;;  %v2234_v30 = vld [vmem:[%s2533_s16 + $0x30] sm:$0xff]  }
 0x121   : > { %2019 = vmatpush3.bf16.xpose.msra.mxu1 %v952_v31  ;;  %v910_v45 = vpack.c.bf16 %v528_v43, %v525_v39  ;;  %v2235_v31 = vld [vmem:[%s2533_s16 + $0x38] sm:$0xff]  }
 0x122   : > { %2123 = vmatprep.subr.msk.bf16.mxu1 %vm926_vm0, %v919_v28  ;;  %v1976_v32 = vpop.f32.mrb[4].mxu1  ;;  %v2232_v28 = vld [vmem:[%s2533_s16 + $0x20] sm:$0xff]  }
 0x123   : > { %v702_v33 = vpop.f32.mrb[5].mxu1  ;;  %2034 = vmatprep.mubr.msk.bf16.mxu1 %vm926_vm0, %v910_v45  ;;  %1991 = vmatpush3.bf16.msra.mxu0 %v2230_v26 }
 0x124   : > { %v1977_v34 = vpop.f32.mrb[6].mxu1  ;;  %1992 = vmatprep.subr.bf16.mxu0 %v2231_v27 }
 0x125   : > { %v921_v35 = vpack.c.bf16 %v1977_v34, %v1976_v32  ;;  %v705_v36 = vpop.f32.mrb[7].mxu1  ;;  %v1944_v51 = vpop.f32.mrb[4].mxu0 }
 0x126   : > { %v920_v37 = vpack.c.bf16 %v705_v36, %v702_v33  ;;  %v541_v52 = vpop.f32.mrb[5].mxu0 }
 0x127   : > { %v1945_v54 = vpop.f32.mrb[6].mxu0  ;;  %v961_v2 = vsel %vm926_vm0, %v921_v35, 0  ;;  %1993 = vmatpush3.bf16.msra.mxu0 %v2231_v27 }
 0x128   : > { %v958_v53 = vsel %vm926_vm0, %v920_v37, 0  ;;  %v913_v55 = vpack.c.bf16 %v1945_v54, %v1944_v51  ;;  %v544_v56 = vpop.f32.mrb[7].mxu0  ;;  %1994 = vmatprep.subr.bf16.mxu0 %v2232_v28 }
 0x129   : > { %2021 = vmatpush3.bf16.xpose.msra.mxu1 %v955_v40  ;;  %v912_v58 = vpack.c.bf16 %v544_v56, %v541_v52 }
 0x12a   : > { %2124 = vmatprep.subr.msk.bf16.mxu1 %vm926_vm0, %v920_v37  ;;  %v1980_v44 = vpop.f32.mrb[8].mxu1 }
 0x12b   : > { %v718_v46 = vpop.f32.mrb[9].mxu1  ;;  %1995 = vmatpush3.bf16.msra.mxu0 %v2232_v28 }
 0x12c   : > { %v1981_v47 = vpop.f32.mrb[10].mxu1  ;;  %1996 = vmatprep.subr.bf16.mxu0 %v2233_v29 }
 0x12d   : > { %v923_v48 = vpack.c.bf16 %v1981_v47, %v1980_v44  ;;  %v721_v49 = vpop.f32.mrb[11].mxu1  ;;  %v1948_v0 = vpop.f32.mrb[8].mxu0 }
 0x12e   : > { %v922_v50 = vpack.c.bf16 %v721_v49, %v718_v46  ;;  %v557_v1 = vpop.f32.mrb[9].mxu0 }
 0x12f   : > { %v1949_v3 = vpop.f32.mrb[10].mxu0  ;;  %v967_v14 = vsel %vm926_vm0, %v923_v48, 0  ;;  %1997 = vmatpush3.bf16.msra.mxu0 %v2233_v29 }
 0x130   : > { %v915_v4 = vpack.c.bf16 %v1949_v3, %v1948_v0  ;;  %v560_v5 = vpop.f32.mrb[11].mxu0  ;;  %v964_v9 = vsel %vm926_vm0, %v922_v50, 0  ;;  %1998 = vmatprep.subr.bf16.mxu0 %v2234_v30 }
 0x131   : > { %2023 = vmatpush3.bf16.xpose.msra.mxu1 %v958_v53  ;;  %v914_v6 = vpack.c.bf16 %v560_v5, %v557_v1 }
 0x132   : > { %2125 = vmatprep.subr.msk.bf16.mxu1 %vm926_vm0, %v921_v35  ;;  %v1984_v57 = vpop.f32.mrb[12].mxu1 }
 0x133   : > { %v734_v59 = vpop.f32.mrb[13].mxu1  ;;  %1999 = vmatpush3.bf16.msra.mxu0 %v2234_v30 }
 0x134   : > { %v1985_v60 = vpop.f32.mrb[14].mxu1  ;;  %2000 = vmatprep.subr.bf16.mxu0 %v2235_v31 }
 0x135   : > { %v925_v61 = vpack.c.bf16 %v1985_v60, %v1984_v57  ;;  %v737_v62 = vpop.f32.mrb[15].mxu1  ;;  %v1952_v7 = vpop.f32.mrb[12].mxu0 }
 0x136   : > { %v924_v63 = vpack.c.bf16 %v737_v62, %v734_v59  ;;  %v573_v8 = vpop.f32.mrb[13].mxu0 }
 0x137   : > { %v1953_v10 = vpop.f32.mrb[14].mxu0  ;;  %v973_v18 = vsel %vm926_vm0, %v925_v61, 0  ;;  %2001 = vmatpush3.bf16.msra.mxu0 %v2235_v31 }
 0x138   : > { %v917_v11 = vpack.c.bf16 %v1953_v10, %v1952_v7  ;;  %v576_v12 = vpop.f32.mrb[15].mxu0  ;;  %v970_v15 = vsel %vm926_vm0, %v924_v63, 0 }
 0x139   : > { %2025 = vmatpush3.bf16.xpose.msra.mxu1 %v961_v2  ;;  %v916_v13 = vpack.c.bf16 %v576_v12, %v573_v8 }
 0x13a   : > { %2126 = vmatprep.subr.msk.bf16.mxu1 %vm926_vm0, %v922_v50  ;;  %2003 = vmatmul.mubr.bf16.vlgmr.msra.gmra.mrb[16].mxu0 %v2559_v16 }
 0x13b   : > { %2006 = vmatprep.mubr.bf16.mxu0 %v2562_v17 }
 0x141   : > { %2027 = vmatpush3.bf16.xpose.msra.mxu1 %v964_v9 }
 0x142   : > { %2127 = vmatprep.subr.msk.bf16.mxu1 %vm926_vm0, %v923_v48  ;;  %2007 = vmatmul.mubr.bf16.gmra.mrb[20].mxu0 %v2569_v20 }
 0x143   : > { %2010 = vmatprep.mubr.bf16.mxu0 %v2572_v21 }
 0x149   : > { %2029 = vmatpush3.bf16.xpose.msra.mxu1 %v967_v14 }
 0x14a   : > { %2128 = vmatprep.subr.msk.bf16.mxu1 %vm926_vm0, %v924_v63  ;;  %2011 = vmatmul.mubr.bf16.gmra.mrb[24].mxu0 %v2577_v22 }
 0x14b   : > { %2014 = vmatprep.mubr.bf16.mxu0 %v2581_v23 }
 0x151   : > { %2031 = vmatpush3.bf16.xpose.msra.mxu1 %v970_v15 }
 0x152   : > { %2129 = vmatprep.subr.msk.bf16.mxu1 %vm926_vm0, %v925_v61  ;;  %2015 = vmatmul.mubr.bf16.gmra.mrb[28].mxu0 %v2587_v24 }
 0x159   : > { %2033 = vmatpush3.bf16.xpose.msra.mxu1 %v973_v18 }
 0x160   : > { %2035 = vmatmul.mubr.msk.bf16.vlgmr.msra.gmra.mrb[16].mxu1 %vm926_vm0, %v911_v42 }
 0x161   : > { %2038 = vmatprep.mubr.msk.bf16.mxu1 %vm926_vm0, %v912_v58 }
 0x168   : > { %2039 = vmatmul.mubr.msk.bf16.gmra.mrb[20].mxu1 %vm926_vm0, %v913_v55 }
 0x169   : > { %2042 = vmatprep.mubr.msk.bf16.mxu1 %vm926_vm0, %v914_v6 }
 0x170   : > { %2043 = vmatmul.mubr.msk.bf16.gmra.mrb[24].mxu1 %vm926_vm0, %v915_v4 }
 0x171   : > { %2046 = vmatprep.mubr.msk.bf16.mxu1 %vm926_vm0, %v916_v13 }
 0x178   : > { %2047 = vmatmul.mubr.msk.bf16.gmra.mrb[28].mxu1 %vm926_vm0, %v917_v11 }
 0x20d   : > { %v2004_v3 = vpop.f32.mrb[16].mxu0 }
 0x20e   : > { %v847_v5 = vpop.f32.mrb[17].mxu0 }
 0x20f   : > { %v2005_v8 = vpop.f32.mrb[18].mxu0 }
 0x210   : > { %v1241_v10 = vpack.c.bf16 %v2005_v8, %v2004_v3  ;;  %v850_v11 = vpop.f32.mrb[19].mxu0 }
 0x211   : > { %v1240_v13 = vpack.c.bf16 %v850_v11, %v847_v5 }
 0x213   : > { %2050 = vmatprep.subr.bf16.mxu0 %v1240_v13  ;;  %2106 = vmatprep.subr.bf16.mxu1 %v1240_v13 }
 0x214   : > { %2051 = vmatpush3.bf16.msra.mxu0 %v1240_v13  ;;  %2114 = vmatpush3.bf16.msra.mxu1 %v1240_v13 }
 0x215   : > { %v2008_v27 = vpop.f32.mrb[20].mxu0  ;;  %2052 = vmatprep.subr.bf16.mxu0 %v1241_v10  ;;  %2107 = vmatprep.subr.bf16.mxu1 %v1241_v10 }
 0x216   : > { %v863_v31 = vpop.f32.mrb[21].mxu0 }
 0x218   : > { %2053 = vmatpush3.bf16.msra.mxu0 %v1241_v10  ;;  %2115 = vmatpush3.bf16.msra.mxu1 %v1241_v10 }
 0x233   : > { %v2036_v32 = vpop.f32.mrb[16].mxu1 }
 0x234   : > { %v1074_v33 = vmul.f32 0.125, %v2036_v32  ;;  %v1009_v34 = vpop.f32.mrb[17].mxu1 }
 0x235   : > { %v1072_v35 = vmul.f32 0.125, %v1009_v34  ;;  %v2037_v36 = vpop.f32.mrb[18].mxu1 }
 0x236   : > { %1092 = vmax.xlane.f32.xlu1 %v1074_v33  ;;  %v1012_v37 = vpop.f32.mrb[19].mxu1  ;;  %v1075_v16 = vmul.f32 0.125, %v2037_v36 }
 0x237   : > { %1088 = vmax.xlane.f32.xlu0 %v1072_v35  ;;  %v1073_v17 = vmul.f32 0.125, %v1012_v37 }
 0x23a   : > { %1094 = vmax.xlane.f32.xlu1 %v1075_v16 }
 0x23b   : > { %1090 = vmax.xlane.f32.xlu0 %v1073_v17  ;;  %v2040_v20 = vpop.f32.mrb[20].mxu1 }
 0x23c   : > { %v1025_v21 = vpop.f32.mrb[21].mxu1  ;;  %v2634_v24 = vmul.f32 0.125, %v2040_v20 }
 0x23d   : > { %v1076_v38 = vmul.f32 0.125, %v1025_v21  ;;  %v2041_v22 = vpop.f32.mrb[22].mxu1 }
 0x23e   : > { %v1028_v39 = vpop.f32.mrb[23].mxu1  ;;  %v2636_v40 = vmul.f32 0.125, %v2041_v22 }
 0x23f   : > { %v1077_v23 = vmul.f32 0.125, %v1028_v39  ;;  %1096 = vmax.xlane.f32.xlu0 %v1076_v38 }
 0x241   : > { %1098 = vmax.xlane.f32.xlu1 %v1077_v23 }
 0x243   : > { %1100 = vmax.xlane.f32.xlu0 %v2634_v24  ;;  %v2044_v41 = vpop.f32.mrb[24].mxu1 }
 0x244   : > { %v1041_v42 = vpop.f32.mrb[25].mxu1  ;;  %v2645_v47 = vmul.f32 0.125, %v2044_v41 }
 0x245   : > { %v2639_v43 = vmul.f32 0.125, %v1041_v42  ;;  %1102 = vmax.xlane.f32.xlu1 %v2636_v40  ;;  %v2045_v44 = vpop.f32.mrb[26].mxu1 }
 0x246   : > { %v1044_v45 = vpop.f32.mrb[27].mxu1  ;;  %v2648_v48 = vmul.f32 0.125, %v2045_v44 }
 0x247   : > { %v2642_v46 = vmul.f32 0.125, %v1044_v45  ;;  %1104 = vmax.xlane.f32.xlu0 %v2639_v43 }
 0x249   : > { %1106 = vmax.xlane.f32.xlu1 %v2642_v46 }
 0x24b   : > { %1108 = vmax.xlane.f32.xlu0 %v2645_v47  ;;  %v2048_v49 = vpop.f32.mrb[28].mxu1 }
 0x24c   : > { %v1057_v50 = vpop.f32.mrb[29].mxu1  ;;  %v2657_v55 = vmul.f32 0.125, %v2048_v49 }
 0x24d   : > { %v2651_v51 = vmul.f32 0.125, %v1057_v50  ;;  %1110 = vmax.xlane.f32.xlu1 %v2648_v48  ;;  %v2049_v52 = vpop.f32.mrb[30].mxu1 }
 0x24e   : > { %v1060_v53 = vpop.f32.mrb[31].mxu1  ;;  %v2660_v56 = vmul.f32 0.125, %v2049_v52 }
 0x24f   : > { %v2654_v54 = vmul.f32 0.125, %v1060_v53  ;;  %1112 = vmax.xlane.f32.xlu0 %v2651_v51 }
 0x251   : > { %1114 = vmax.xlane.f32.xlu1 %v2654_v54 }
 0x253   : > { %1116 = vmax.xlane.f32.xlu0 %v2657_v55 }
 0x255   : > { %1118 = vmax.xlane.f32.xlu1 %v2660_v56 }
 0x2c3   : > { %v1093_v57 = vpop.xlane.xlu1 %1092 }
 0x2c4   : > { %v1122_v58 = vsub.f32 %v1074_v33, %v1093_v57  ;;  %v1089_v59 = vpop.xlane.xlu0 %1088  ;;  %v2009_v33 = vpop.f32.mrb[22].mxu0 }
 0x2c5   : > { %v1120_v60 = vsub.f32 %v1072_v35, %v1089_v59  ;;  %v1243_v36 = vpack.c.bf16 %v2009_v33, %v2008_v27  ;;  %v866_v37 = vpop.f32.mrb[23].mxu0 }
 0x2c6   : > { %v1140_v63 = vmul.f32 1.442695, %v1122_v58  ;;  %v1242_v20 = vpack.c.bf16 %v866_v37, %v863_v31  ;;  %v2012_v42 = vpop.f32.mrb[24].mxu0 }
 0x2c7   : > { %v1136_v61 = vmul.f32 1.442695, %v1120_v60  ;;  %v1095_v62 = vpop.xlane.xlu1 %1094 }
 0x2c8   : > { %v1123_v0 = vsub.f32 %v1075_v16, %v1095_v62  ;;  %v1091_v1 = vpop.xlane.xlu0 %1090  ;;  %2054 = vmatprep.subr.bf16.mxu0 %v1242_v20  ;;  %2108 = vmatprep.subr.bf16.mxu1 %v1242_v20 }
 0x2c9   : > { %2240 = vpow2.f32 %v1136_v61  ;;  %v1121_v2 = vsub.f32 %v1073_v17, %v1091_v1  ;;  %2055 = vmatpush3.bf16.msra.mxu0 %v1242_v20  ;;  %2116 = vmatpush3.bf16.msra.mxu1 %v1242_v20 }
 0x2ca   : > { %2242 = vpow2.f32 %v1140_v63  ;;  %v1142_v6 = vmul.f32 1.442695, %v1123_v0  ;;  %2056 = vmatprep.subr.bf16.mxu0 %v1243_v36  ;;  %2109 = vmatprep.subr.bf16.mxu1 %v1243_v36 }
 0x2cb   : > { %v1138_v4 = vmul.f32 1.442695, %v1121_v2 }
 0x2cc   : > { %v1097_v7 = vpop.xlane.xlu0 %1096 }
 0x2cd   : > { %2244 = vpow2.f32 %v1138_v4  ;;  %v1124_v9 = vsub.f32 %v1076_v38, %v1097_v7  ;;  %2057 = vmatpush3.bf16.msra.mxu0 %v1243_v36  ;;  %2117 = vmatpush3.bf16.msra.mxu1 %v1243_v36 }
 0x2ce   : > { %v1099_v12 = vpop.xlane.xlu1 %1098  ;;  %2246 = vpow2.f32 %v1142_v6 }
 0x2cf   : > { %v1144_v14 = vmul.f32 1.442695, %v1124_v9  ;;  %v1125_v15 = vsub.f32 %v1077_v23, %v1099_v12 }
 0x2d0   : > { %v1101_v18 = vpop.xlane.xlu0 %1100 }
 0x2d1   : > { %2248 = vpow2.f32 %v1144_v14  ;;  %v1146_v19 = vmul.f32 1.442695, %v1125_v15  ;;  %v1126_v25 = vsub.f32 %v2634_v24, %v1101_v18 }
 0x2d2   : > { %v1103_v26 = vpop.xlane.xlu1 %1102 }
 0x2d3   : > { %v2665_v28 = vpop.eup %2240  ;;  %v1148_v29 = vmul.f32 1.442695, %v1126_v25  ;;  %v1127_v30 = vsub.f32 %v2636_v40, %v1103_v26  ;;  %2250 = vpow2.f32 %v1146_v19  ;;  %v2236_v19 = vld [vmem:[%s2538_s20] sm:$0xff]  }
 0x2d4   : > { %v1105_v32 = vpop.xlane.xlu0 %1104  ;;  %1168 = vadd.xlane.f32.xlu0 %v2665_v28  ;;  %v2670_v16 = vpop.eup %2242 }
 0x2d5   : > { %2252 = vpow2.f32 %v1148_v29  ;;  %v1150_v34 = vmul.f32 1.442695, %v1127_v30  ;;  %v1128_v35 = vsub.f32 %v2639_v43, %v1105_v32 }
 0x2d6   : > { %v1107_v17 = vpop.xlane.xlu1 %1106 }
 0x2d7   : > { %v2672_v21 = vpop.eup %2244  ;;  %v1152_v38 = vmul.f32 1.442695, %v1128_v35  ;;  %v1129_v22 = vsub.f32 %v2642_v46, %v1107_v17  ;;  %2254 = vpow2.f32 %v1150_v34  ;;  %v879_v46 = vpop.f32.mrb[25].mxu0 }
 0x2d8   : > { %v1109_v39 = vpop.xlane.xlu0 %1108  ;;  %1172 = vadd.xlane.f32.xlu0 %v2670_v16  ;;  %1170 = vadd.xlane.f32.xlu1 %v2672_v21  ;;  %v2678_v40 = vpop.eup %2246 }
 0x2d9   : > { %2256 = vpow2.f32 %v1152_v38  ;;  %v1154_v23 = vmul.f32 1.442695, %v1129_v22  ;;  %v1130_v24 = vsub.f32 %v2645_v47, %v1109_v39  ;;  %v2013_v49 = vpop.f32.mrb[26].mxu0 }
 0x2da   : > { %v1111_v41 = vpop.xlane.xlu1 %1110  ;;  %v1245_v53 = vpack.c.bf16 %v2013_v49, %v2012_v42  ;;  %v882_v57 = vpop.f32.mrb[27].mxu0 }
 0x2db   : > { %v2680_v43 = vpop.eup %2248  ;;  %v1156_v44 = vmul.f32 1.442695, %v1130_v24  ;;  %v1131_v45 = vsub.f32 %v2648_v48, %v1111_v41  ;;  %2258 = vpow2.f32 %v1154_v23  ;;  %v1244_v48 = vpack.c.bf16 %v882_v57, %v879_v46  ;;  %v2016_v3 = vpop.f32.mrb[28].mxu0 }
 0x2dc   : > { %1176 = vadd.xlane.f32.xlu0 %v2680_v43  ;;  %v1113_v47 = vpop.xlane.xlu0 %1112  ;;  %1174 = vadd.xlane.f32.xlu1 %v2678_v40  ;;  %v895_v6 = vpop.f32.mrb[29].mxu0 }
 0x2dd   : > { %2260 = vpow2.f32 %v1156_v44  ;;  %v1158_v50 = vmul.f32 1.442695, %v1131_v45  ;;  %v1132_v52 = vsub.f32 %v2651_v51, %v1113_v47  ;;  %v2686_v58 = vpop.eup %2250  ;;  %2058 = vmatprep.subr.bf16.mxu0 %v1244_v48  ;;  %2110 = vmatprep.subr.bf16.mxu1 %v1244_v48  ;;  %v2237_v45 = vld [vmem:[%s2538_s20 + $0x8] sm:$0xff]  }
 0x2de   : > { %v1115_v59 = vpop.xlane.xlu1 %1114  ;;  %2059 = vmatpush3.bf16.msra.mxu0 %v1244_v48  ;;  %2118 = vmatpush3.bf16.msra.mxu1 %v1244_v48 }
 0x2df   : > { %v2688_v60 = vpop.eup %2252  ;;  %v1160_v61 = vmul.f32 1.442695, %v1132_v52  ;;  %v1133_v62 = vsub.f32 %v2654_v54, %v1115_v59  ;;  %2262 = vpow2.f32 %v1158_v50  ;;  %2060 = vmatprep.subr.bf16.mxu0 %v1245_v53  ;;  %2111 = vmatprep.subr.bf16.mxu1 %v1245_v53 }
 0x2e0   : > { %1180 = vadd.xlane.f32.xlu0 %v2688_v60  ;;  %v1117_v63 = vpop.xlane.xlu0 %1116  ;;  %1178 = vadd.xlane.f32.xlu1 %v2686_v58 }
 0x2e1   : > { %2264 = vpow2.f32 %v1160_v61  ;;  %v1162_v51 = vmul.f32 1.442695, %v1133_v62  ;;  %v1134_v0 = vsub.f32 %v2657_v55, %v1117_v63  ;;  %v2694_v1 = vpop.eup %2254  ;;  %v2017_v55 = vpop.f32.mrb[30].mxu0 }
 0x2e2   : > { %v1119_v2 = vpop.xlane.xlu1 %1118  ;;  %v1247_v8 = vpack.c.bf16 %v2017_v55, %v2016_v3  ;;  %2061 = vmatpush3.bf16.msra.mxu0 %v1245_v53  ;;  %2119 = vmatpush3.bf16.msra.mxu1 %v1245_v53  ;;  %v898_v11 = vpop.f32.mrb[31].mxu0 }
 0x2e3   : > { %v2696_v4 = vpop.eup %2256  ;;  %v1164_v54 = vmul.f32 1.442695, %v1134_v0  ;;  %v1135_v5 = vsub.f32 %v2660_v56, %v1119_v2  ;;  %2266 = vpow2.f32 %v1162_v51  ;;  %v1246_v56 = vpack.c.bf16 %v898_v11, %v895_v6 }
 0x2e4   : > { %1184 = vadd.xlane.f32.xlu0 %v2696_v4  ;;  %1182 = vadd.xlane.f32.xlu1 %v2694_v1 }
 0x2e5   : > { %2268 = vpow2.f32 %v1164_v54  ;;  %v1166_v7 = vmul.f32 1.442695, %v1135_v5  ;;  %v2701_v9 = vpop.eup %2258  ;;  %2062 = vmatprep.subr.bf16.mxu0 %v1246_v56  ;;  %2112 = vmatprep.subr.bf16.mxu1 %v1246_v56 }
 0x2e6   : > { %2063 = vmatpush3.bf16.msra.mxu0 %v1246_v56  ;;  %2120 = vmatpush3.bf16.msra.mxu1 %v1246_v56 }
 0x2e7   : > { %v2703_v10 = vpop.eup %2260  ;;  %2270 = vpow2.f32 %v1166_v7  ;;  %2064 = vmatprep.subr.bf16.mxu0 %v1247_v8  ;;  %2113 = vmatprep.subr.bf16.mxu1 %v1247_v8 }
 0x2e8   : > { %1188 = vadd.xlane.f32.xlu0 %v2703_v10  ;;  %1186 = vadd.xlane.f32.xlu1 %v2701_v9 }
 0x2e9   : > { %v2707_v12 = vpop.eup %2262 }
 0x2ea   : > { %2065 = vmatpush3.bf16.msra.mxu0 %v1247_v8  ;;  %2121 = vmatpush3.bf16.msra.mxu1 %v1247_v8 }
 0x2eb   : > { %v2709_v13 = vpop.eup %2264  ;;  %2082 = vmatprep.subr.bf16.mxu0 %v2236_v19 }
 0x2ec   : > { %1192 = vadd.xlane.f32.xlu0 %v2709_v13  ;;  %1190 = vadd.xlane.f32.xlu1 %v2707_v12 }
 0x2ed   : > { %v2713_v14 = vpop.eup %2266 }
 0x2ef   : > { %v2715_v15 = vpop.eup %2268 }
 0x2f0   : > { %1196 = vadd.xlane.f32.xlu0 %v2715_v15  ;;  %1194 = vadd.xlane.f32.xlu1 %v2713_v14 }
 0x2f1   : > { %v2719_v18 = vpop.eup %2270 }
 0x2f4   : > { %1198 = vadd.xlane.f32.xlu1 %v2719_v18 }
 0x361   : > { %v1169_v25 = vpop.xlane.xlu0 %1168 }
 0x362   : > { %2272 = vrcp.f32 %v1169_v25 }
 0x365   : > { %v1173_v26 = vpop.xlane.xlu0 %1172  ;;  %v1171_v27 = vpop.xlane.xlu1 %1170 }
 0x366   : > { %2274 = vrcp.f32 %v1171_v27 }
 0x367   : > { %2276 = vrcp.f32 %v1173_v26 }
 0x369   : > { %v1177_v29 = vpop.xlane.xlu0 %1176  ;;  %v1175_v30 = vpop.xlane.xlu1 %1174 }
 0x36a   : > { %2278 = vrcp.f32 %v1175_v30 }
 0x36b   : > { %2280 = vrcp.f32 %v1177_v29 }
 0x36c   : > { %v2273_v33 = vpop.eup %2272 }
 0x36d   : > { %v1181_v31 = vpop.xlane.xlu0 %1180  ;;  %v1179_v32 = vpop.xlane.xlu1 %1178  ;;  %v1216_v37 = vmul.f32 %v2273_v33, %v2665_v28 }
 0x36e   : > { %2282 = vrcp.f32 %v1179_v32 }
 0x36f   : > { %2284 = vrcp.f32 %v1181_v31 }
 0x370   : > { %v2275_v34 = vpop.eup %2274 }
 0x371   : > { %v1185_v35 = vpop.xlane.xlu0 %1184  ;;  %v1183_v36 = vpop.xlane.xlu1 %1182  ;;  %v1217_v17 = vmul.f32 %v2275_v34, %v2672_v21 }
 0x372   : > { %v2277_v20 = vpop.eup %2276  ;;  %2286 = vrcp.f32 %v1183_v36 }
 0x373   : > { %v1232_v38 = vpack.c.bf16 %v1217_v17, %v1216_v37  ;;  %2288 = vrcp.f32 %v1185_v35  ;;  %v1218_v24 = vmul.f32 %v2277_v20, %v2670_v16 }
 0x374   : > { %v2279_v22 = vpop.eup %2278 }
 0x375   : > { %v1189_v39 = vpop.xlane.xlu0 %1188  ;;  %v1187_v23 = vpop.xlane.xlu1 %1186  ;;  %v1219_v41 = vmul.f32 %v2279_v22, %v2678_v40  ;;  %2066 = vmatprep.mubr.bf16.mxu0 %v1232_v38  ;;  %v2238_v40 = vld [vmem:[%s2538_s20 + $0x10] sm:$0xff]  }
 0x376   : > { %v2281_v42 = vpop.eup %2280  ;;  %2290 = vrcp.f32 %v1187_v23 }
 0x377   : > { %v1233_v44 = vpack.c.bf16 %v1219_v41, %v1218_v24  ;;  %2292 = vrcp.f32 %v1189_v39  ;;  %v1220_v47 = vmul.f32 %v2281_v42, %v2680_v43  ;;  %v1347_v41 = vld [vmem:[#allocation2 + $0x10] sm:$0xff]  ;;  %v1345_v42 = vld [vmem:[#allocation2] sm:$0xff] }
 0x378   : > { %v2283_v28 = vpop.eup %2282 }
 0x379   : > { %v1193_v21 = vpop.xlane.xlu0 %1192  ;;  %v1191_v46 = vpop.xlane.xlu1 %1190  ;;  %2067 = vmatmul.mubr.bf16.vlgmr.msra.gmra.mrb[32].mxu0 %v1233_v44  ;;  %v1221_v49 = vmul.f32 %v2283_v28, %v2686_v58 }
 0x37a   : > { %v2285_v50 = vpop.eup %2284  ;;  %2294 = vrcp.f32 %v1191_v46  ;;  %2083 = vmatpush3.bf16.msra.mxu0 %v2236_v19  ;;  %v1346_v46 = vld [vmem:[#allocation2 + $0x8] sm:$0xff] }
 0x37b   : > { %v1234_v16 = vpack.c.bf16 %v1221_v49, %v1220_v47  ;;  %2084 = vmatprep.subr.bf16.mxu0 %v2237_v45  ;;  %2296 = vrcp.f32 %v1193_v21  ;;  %v1222_v59 = vmul.f32 %v2285_v50, %v2688_v60 }
 0x37c   : > { %v2287_v52 = vpop.eup %2286 }
 0x37d   : > { %v1197_v53 = vpop.xlane.xlu0 %1196  ;;  %v1195_v57 = vpop.xlane.xlu1 %1194  ;;  %2070 = vmatprep.mubr.bf16.mxu0 %v1234_v16  ;;  %v1223_v48 = vmul.f32 %v2287_v52, %v2694_v1  ;;  %v1351_v52 = vld [vmem:[#allocation2 + $0x30] sm:$0xff] }
 0x37e   : > { %v2289_v61 = vpop.eup %2288  ;;  %2298 = vrcp.f32 %v1195_v57  ;;  %2085 = vmatpush3.bf16.msra.mxu0 %v2237_v45  ;;  %v1348_v45 = vld [vmem:[#allocation2 + $0x18] sm:$0xff] }
 0x37f   : > { %2300 = vrcp.f32 %v1197_v53  ;;  %v1235_v43 = vpack.c.bf16 %v1223_v48, %v1222_v59  ;;  %2086 = vmatprep.subr.bf16.mxu0 %v2238_v40  ;;  %v1224_v63 = vmul.f32 %v2289_v61, %v2696_v4  ;;  %v1349_v53 = vld [vmem:[#allocation2 + $0x20] sm:$0xff]  ;;  %v1352_v59 = vld [vmem:[#allocation2 + $0x38] sm:$0xff] }
 0x380   : > { %v2291_v58 = vpop.eup %2290 }
 0x381   : > { %v1199_v62 = vpop.xlane.xlu1 %1198  ;;  %2071 = vmatmul.mubr.bf16.gmra.mrb[36].mxu0 %v1235_v43  ;;  %v1225_v51 = vmul.f32 %v2291_v58, %v2701_v9  ;;  %v2293_v0 = vpop.eup %2292  ;;  %v1350_v43 = vld [vmem:[#allocation2 + $0x28] sm:$0xff] }
 0x382   : > { %2302 = vrcp.f32 %v1199_v62  ;;  %2087 = vmatpush3.bf16.msra.mxu0 %v2238_v40  ;;  %v1226_v1 = vmul.f32 %v2293_v0, %v2703_v10 }
 0x383   : > { %v1236_v2 = vpack.c.bf16 %v1225_v51, %v1224_v63 }
 0x384   : > { %v2295_v60 = vpop.eup %2294 }
 0x385   : > { %v1227_v3 = vmul.f32 %v2295_v60, %v2707_v12  ;;  %2074 = vmatprep.mubr.bf16.mxu1 %v1236_v2  ;;  %v2297_v54 = vpop.eup %2296  ;;  %v2239_v12 = vld [vmem:[%s2538_s20 + $0x18] sm:$0xff]   ;;  %v1355_v2 = vld [vmem:[#allocation2 + $0x50] sm:$0xff]  ;;  %v1353_v60 = vld [vmem:[#allocation2 + $0x40] sm:$0xff] }
 0x386   : > { %v1228_v7 = vmul.f32 %v2297_v54, %v2709_v13  ;;  %2088 = vmatprep.subr.bf16.mxu0 %v2239_v12 }
 0x387   : > { %v1237_v5 = vpack.c.bf16 %v1227_v3, %v1226_v1  ;;  %2089 = vmatpush3.bf16.msra.mxu0 %v2239_v12  ;;  %v1356_v3 = vld [vmem:[#allocation2 + $0x58] sm:$0xff] }
 0x388   : > { %v2299_v6 = vpop.eup %2298  ;;  %v1360_v12 = vld [vmem:[#allocation2 + $0x78] sm:$0xff] }
 0x389   : > { %v2301_v55 = vpop.eup %2300  ;;  %2075 = vmatmul.mubr.bf16.vlgmr.msra.gmra.mrb[32].mxu1 %v1237_v5  ;;  %v1229_v4 = vmul.f32 %v2299_v6, %v2713_v14  ;;  %v1354_v6 = vld [vmem:[#allocation2 + $0x48] sm:$0xff] }
 0x38a   : > { %v1230_v11 = vmul.f32 %v2301_v55, %v2715_v15 }
 0x38b   : > { %v1238_v9 = vpack.c.bf16 %v1229_v4, %v1228_v7 }
 0x38c   : > { %v2303_v8 = vpop.eup %2302 }
 0x38d   : > { %v1231_v56 = vmul.f32 %v2303_v8, %v2719_v18  ;;  %2078 = vmatprep.mubr.bf16.mxu1 %v1238_v9 }
 0x38f   : > { %v1239_v10 = vpack.c.bf16 %v1231_v56, %v1230_v11  ;;  %v1359_v11 = vld [vmem:[#allocation2 + $0x70] sm:$0xff]  ;;  %v1357_v56 = vld [vmem:[#allocation2 + $0x60] sm:$0xff] }
 0x391   : > { %2079 = vmatmul.mubr.bf16.gmra.mrb[36].mxu1 %v1239_v10 }
 0x44c   : > { %v2068_v19 = vpop.f32.mrb[32].mxu0 }
 0x44d   : > { %v1282_v25 = vpop.f32.mrb[33].mxu0 }
 0x44e   : > { %v2069_v26 = vpop.f32.mrb[34].mxu0 }
 0x44f   : > { %v1362_v27 = vpack.c.bf16 %v2069_v26, %v2068_v19  ;;  %v1285_v29 = vpop.f32.mrb[35].mxu0  ;;  %v1358_v26 = vld [vmem:[#allocation2 + $0x68] sm:$0xff] }
 0x450   : > { %v1361_v13 = vpack.c.bf16 %v1285_v29, %v1282_v25 }
 0x452   : > { %2090 = vmatprep.mubr.msk.bf16.mxu0 %vm926_vm0, %v1361_v13 }
 0x453   : > { %2091 = vmatmul.mubr.msk.bf16.vlgmr.msra.gmra.mrb[40].mxu0 %vm926_vm0, %v1362_v27 }
 0x454   : > { %v2072_v14 = vpop.f32.mrb[36].mxu0 }
 0x455   : > { %v1298_v15 = vpop.f32.mrb[37].mxu0 }
 0x456   : > { %v2073_v30 = vpop.f32.mrb[38].mxu0 }
 0x457   : > { %v1364_v18 = vpack.c.bf16 %v2073_v30, %v2072_v14  ;;  %v1301_v31 = vpop.f32.mrb[39].mxu0 }
 0x458   : > { %v1363_v32 = vpack.c.bf16 %v1301_v31, %v1298_v15 }
 0x45a   : > { %2094 = vmatprep.mubr.msk.bf16.mxu0 %vm926_vm0, %v1363_v32 }
 0x45b   : > { %2095 = vmatmul.mubr.msk.bf16.gmra.mrb[44].mxu0 %vm926_vm0, %v1364_v18  ;;  %v1818_v18 = vld [vmem:[%s2838_s5] ss:$0 sm:$0xff] (!%p1817_p1) }
 0x45c   : > { %v2076_v33 = vpop.f32.mrb[32].mxu1 }
 0x45d   : > { %v1314_v34 = vpop.f32.mrb[33].mxu1 }
 0x45e   : > { %v2077_v35 = vpop.f32.mrb[34].mxu1 }
 0x45f   : > { %v1366_v36 = vpack.c.bf16 %v2077_v35, %v2076_v33  ;;  %v1317_v37 = vpop.f32.mrb[35].mxu1 }
 0x460   : > { %v1365_v17 = vpack.c.bf16 %v1317_v37, %v1314_v34 }
 0x462   : > { %2098 = vmatprep.mubr.msk.bf16.mxu0 %vm926_vm0, %v1365_v17 }
 0x463   : > { %2099 = vmatmul.mubr.msk.bf16.gmra.mrb[48].mxu0 %vm926_vm0, %v1366_v36 }
 0x464   : > { %v2080_v20 = vpop.f32.mrb[36].mxu1 }
 0x465   : > { %v1330_v38 = vpop.f32.mrb[37].mxu1 }
 0x466   : > { %v2081_v22 = vpop.f32.mrb[38].mxu1 }
 0x467   : > { %v1368_v39 = vpack.c.bf16 %v2081_v22, %v2080_v20  ;;  %v1333_v23 = vpop.f32.mrb[39].mxu1 }
 0x468   : > { %v1367_v24 = vpack.c.bf16 %v1333_v23, %v1330_v38 }
 0x46a   : > { %2102 = vmatprep.mubr.msk.bf16.mxu0 %vm926_vm0, %v1367_v24 }
 0x46b   : > { %2103 = vmatmul.mubr.msk.bf16.gmra.mrb[52].mxu0 %vm926_vm0, %v1368_v39 }
 0x526   : > { %v2092_v44 = vpop.f32.mrb[40].mxu0 }
 0x527   : > { %v1524_v28 = vadd.f32 %v2092_v44, %v1347_v41  ;;  %v1459_v21 = vpop.f32.mrb[41].mxu0 }
 0x528   : > { %v1522_v47 = vadd.f32 %v1459_v21, %v1345_v42  ;;  %v2093_v49 = vpop.f32.mrb[42].mxu0 }
 0x529   : > { %1540 = vst [vmem:[#allocation2 + $0x10] sm:$0xff] %v1524_v28  ;;  %v1525_v50 = vadd.f32 %v2093_v49, %v1348_v45  ;;  %v1462_v16 = vpop.f32.mrb[43].mxu0 }
 0x52a   : > { %1538 = vst [vmem:[#allocation2] sm:$0xff] %v1522_v47  ;;  %v1523_v40 = vadd.f32 %v1462_v16, %v1346_v46 }
 0x52b   : > { %1541 = vst [vmem:[#allocation2 + $0x18] sm:$0xff] %v1525_v50 }
 0x52c   : > { %1539 = vst [vmem:[#allocation2 + $0x8] sm:$0xff] %v1523_v40 }
 0x52e   : > { %v2096_v57 = vpop.f32.mrb[44].mxu0 }
 0x52f   : > { %v1528_v48 = vadd.f32 %v2096_v57, %v1351_v52  ;;  %v1475_v61 = vpop.f32.mrb[45].mxu0 }
 0x530   : > { %v1526_v58 = vadd.f32 %v1475_v61, %v1349_v53  ;;  %v2097_v62 = vpop.f32.mrb[46].mxu0  ;;  %v1560_v34 = vld [vmem:[#allocation2 + $0x10] sm:$0xff] (!%p1817_p1) }
 0x531   : > { %1544 = vst [vmem:[#allocation2 + $0x30] sm:$0xff] %v1528_v48  ;;  %v1529_v63 = vadd.f32 %v2097_v62, %v1352_v59  ;;  %v1478_v51 = vpop.f32.mrb[47].mxu0  ;;  %v1558_v30 = vld [vmem:[#allocation2] sm:$0xff] (!%p1817_p1)  ;;  %v1583_v37 = vadd.f32 (!%p1817_p1), %v1818_v18, %v1560_v34 }
 0x532   : > { %1542 = vst [vmem:[#allocation2 + $0x20] sm:$0xff] %v1526_v58  ;;  %v1527_v0 = vadd.f32 %v1478_v51, %v1350_v43  ;;  %v1581_v32 = vadd.f32 (!%p1817_p1), %v1818_v18, %v1558_v30  ;;  %v1561_v35 = vld [vmem:[#allocation2 + $0x18] sm:$0xff] (!%p1817_p1) }
 0x533   : > { %1545 = vst [vmem:[#allocation2 + $0x38] sm:$0xff] %v1529_v63  ;;  %v1559_v31 = vld [vmem:[#allocation2 + $0x8] sm:$0xff] (!%p1817_p1)  ;;  %v1584_v17 = vadd.f32 (!%p1817_p1), %v1818_v18, %v1561_v35  ;;  %1599 = vst [vmem:[%s2540_s0 + $0x10] sm:$0xff] (!%p1817_p1), %v1583_v37 }
 0x534   : > { %1543 = vst [vmem:[#allocation2 + $0x28] sm:$0xff] %v1527_v0  ;;  %v1582_v33 = vadd.f32 (!%p1817_p1), %v1818_v18, %v1559_v31  ;;  %1597 = vst [vmem:[%s2540_s0] sm:$0xff] (!%p1817_p1), %v1581_v32 }
 0x535   : > { %1600 = vst [vmem:[%s2540_s0 + $0x18] sm:$0xff] (!%p1817_p1), %v1584_v17 }
 0x536   : > { %v2100_v1 = vpop.f32.mrb[48].mxu0  ;;  %1598 = vst [vmem:[%s2540_s0 + $0x8] sm:$0xff] (!%p1817_p1), %v1582_v33 }
 0x537   : > { %v1532_v54 = vadd.f32 %v2100_v1, %v1355_v2  ;;  %v1491_v5 = vpop.f32.mrb[49].mxu0 }
 0x538   : > { %v1530_v55 = vadd.f32 %v1491_v5, %v1353_v60  ;;  %v2101_v7 = vpop.f32.mrb[50].mxu0  ;;  %v1564_v22 = vld [vmem:[#allocation2 + $0x30] sm:$0xff] (!%p1817_p1) }
 0x539   : > { %1548 = vst [vmem:[#allocation2 + $0x50] sm:$0xff] %v1532_v54  ;;  %v1533_v4 = vadd.f32 %v2101_v7, %v1356_v3  ;;  %v1494_v8 = vpop.f32.mrb[51].mxu0  ;;  %v1562_v36 = vld [vmem:[#allocation2 + $0x20] sm:$0xff] (!%p1817_p1)  ;;  %v1587_v24 = vadd.f32 (!%p1817_p1), %v1818_v18, %v1564_v22 }
 0x53a   : > { %1546 = vst [vmem:[#allocation2 + $0x40] sm:$0xff] %v1530_v55  ;;  %v1531_v9 = vadd.f32 %v1494_v8, %v1354_v6  ;;  %v1585_v20 = vadd.f32 (!%p1817_p1), %v1818_v18, %v1562_v36  ;;  %v1565_v39 = vld [vmem:[#allocation2 + $0x38] sm:$0xff] (!%p1817_p1) }
 0x53b   : > { %1549 = vst [vmem:[#allocation2 + $0x58] sm:$0xff] %v1533_v4  ;;  %v1563_v38 = vld [vmem:[#allocation2 + $0x28] sm:$0xff] (!%p1817_p1)  ;;  %v1588_v41 = vadd.f32 (!%p1817_p1), %v1818_v18, %v1565_v39  ;;  %1603 = vst [vmem:[%s2540_s0 + $0x30] sm:$0xff] (!%p1817_p1), %v1587_v24 }
 0x53c   : > { %1547 = vst [vmem:[#allocation2 + $0x48] sm:$0xff] %v1531_v9  ;;  %v1586_v23 = vadd.f32 (!%p1817_p1), %v1818_v18, %v1563_v38  ;;  %1601 = vst [vmem:[%s2540_s0 + $0x20] sm:$0xff] (!%p1817_p1), %v1585_v20 }
 0x53d   : > { %1604 = vst [vmem:[%s2540_s0 + $0x38] sm:$0xff] (!%p1817_p1), %v1588_v41 }
 0x53e   : > { %v2104_v10 = vpop.f32.mrb[52].mxu0  ;;  %1557 = sbr.rel (%p1817_p1) target bundleno = 1359 (0x54f), region = 52  ;;  %1602 = vst [vmem:[%s2540_s0 + $0x28] sm:$0xff] (!%p1817_p1), %v1586_v23 }
 0x53f   : > { %v1536_v19 = vadd.f32 %v2104_v10, %v1359_v11  ;;  %v1507_v25 = vpop.f32.mrb[53].mxu0 }
 0x540   : > { %v1534_v27 = vadd.f32 %v1507_v25, %v1357_v56  ;;  %v2105_v29 = vpop.f32.mrb[54].mxu0  ;;  %v1568_v45 = vld [vmem:[#allocation2 + $0x50] sm:$0xff] (!%p1817_p1) }
 0x541   : > { %1552 = vst [vmem:[#allocation2 + $0x70] sm:$0xff] %v1536_v19  ;;  %v1537_v13 = vadd.f32 %v2105_v29, %v1360_v12  ;;  %v1510_v14 = vpop.f32.mrb[55].mxu0  ;;  %v1566_v42 = vld [vmem:[#allocation2 + $0x40] sm:$0xff] (!%p1817_p1)  ;;  %v1591_v46 = vadd.f32 (!%p1817_p1), %v1818_v18, %v1568_v45 }
 0x542   : > { %1550 = vst [vmem:[#allocation2 + $0x60] sm:$0xff] %v1534_v27  ;;  %v1535_v15 = vadd.f32 %v1510_v14, %v1358_v26  ;;  %v1589_v28 = vadd.f32 (!%p1817_p1), %v1818_v18, %v1566_v42  ;;  %v1569_v47 = vld [vmem:[#allocation2 + $0x58] sm:$0xff] (!%p1817_p1) }
 0x543   : > { %1553 = vst [vmem:[#allocation2 + $0x78] sm:$0xff] %v1537_v13  ;;  %v1567_v44 = vld [vmem:[#allocation2 + $0x48] sm:$0xff] (!%p1817_p1)  ;;  %v1592_v16 = vadd.f32 (!%p1817_p1), %v1818_v18, %v1569_v47  ;;  %1607 = vst [vmem:[%s2540_s0 + $0x50] sm:$0xff] (!%p1817_p1), %v1591_v46 }
 0x544   : > { %1551 = vst [vmem:[#allocation2 + $0x68] sm:$0xff] %v1535_v15  ;;  %v1590_v21 = vadd.f32 (!%p1817_p1), %v1818_v18, %v1567_v44  ;;  %1605 = vst [vmem:[%s2540_s0 + $0x40] sm:$0xff] (!%p1817_p1), %v1589_v28 }
 0x545   : > { %1608 = vst [vmem:[%s2540_s0 + $0x58] sm:$0xff] %v1592_v16 }
 0x546   : > { %1606 = vst [vmem:[%s2540_s0 + $0x48] sm:$0xff] %v1590_v21 }
 0x548   : > { %v1572_v53 = vld [vmem:[#allocation2 + $0x70] sm:$0xff] }
 0x549   : > { %v1570_v49 = vld [vmem:[#allocation2 + $0x60] sm:$0xff]  ;;  %v1595_v59 = vadd.f32 %v1818_v18, %v1572_v53 }
 0x54a   : > { %v1593_v40 = vadd.f32 %v1818_v18, %v1570_v49  ;;  %v1573_v57 = vld [vmem:[#allocation2 + $0x78] sm:$0xff] }
 0x54b   : > { %v1571_v50 = vld [vmem:[#allocation2 + $0x68] sm:$0xff]  ;;  %v1596_v48 = vadd.f32 %v1818_v18, %v1573_v57  ;;  %1611 = vst [vmem:[%s2540_s0 + $0x70] sm:$0xff] %v1595_v59 }
 0x54c   : > { %v1594_v52 = vadd.f32 %v1818_v18, %v1571_v50  ;;  %1609 = vst [vmem:[%s2540_s0 + $0x60] sm:$0xff] %v1593_v40 }
 0x54d   : > { %1612 = vst [vmem:[%s2540_s0 + $0x78] sm:$0xff] %v1596_v48 }
 0x54e   : > { %1610 = vst [vmem:[%s2540_s0 + $0x68] sm:$0xff] %v1594_v52 }
 0x54f PF: > { %s1829_s24 = sshll.u32 %s2386_s25, 11  ;;  %s1627_s13 = sshll.u32 %s2540_s0, 4  ;;  %s2777_s13 = int_to_ptr.vmem [resolvable:$true] %s1627_s13 }
 0x550   : > { %s2774_s8 = scalar_lea.hbm %s2839_s6, %s1829_s24  ;;  %s2855_s14 = sand.u32 1, %s2374_s22  }
 0x551   : > { %s2781_s15 = scalar_lea.sflag [#allocation4], %s2855_s14  ;;  %s2304_s17 = scalar_lea.vmem %s2777_s13, 2048 }
 0x552   : > { %p2305_p2 = scmp.ne.s32.totalorder %s2777_s13, %s2304_s17  ;;  %s2401_s25 = smov [#allocation3]  }
 0x553   : > { %s2308_s29 = sshll.u32 %s2401_s25, 4  ;;  %s2309_s29 = int_to_ptr.vmem [resolvable:$false] %s2308_s29 }
 0x554   : > { %p2306_p4 = pnand %p2305_p2, %p2488_p3  ;;  %s2310_s30 = scalar_lea.vmem %s2309_s29, 4096 }
 0x555   : > { %p2311_p6 = scmp.lt.s32.totalorder %s2777_s13, %s2309_s29  ;;  %p2312_p7 = scmp.lt.s32.totalorder %s2310_s30, %s2304_s17 }
 0x556   : > { %p2307_p5 = pneg %p2306_p4 }
 0x557   : > { %p2313_p8 = por %p2312_p7, %p2311_p6 }
 0x559   : > { %p2314_p10 = pnand %p2313_p8, %p2307_p5 }
 0x55b   : > { %2317 = shalt.err (!%p2314_p10)
}
 0x55c   : > { %s2318_s0 = scalar_lea.hbm %s2774_s8, 2048  ;;  %s2322_s16 = scalar_lea.hbm %s2839_s6, 4096 }
 0x55d   : > { %p2319_p11 = scmp.ne.s32.totalorder %s2774_s8, %s2318_s0  ;;  %p2323_p0 = scmp.lt.u32.totalorder %s2774_s8, %s2839_s6 }
 0x55e   : > { %p2324_p1 = scmp.lt.u32.totalorder %s2322_s16, %s2318_s0  ;;  %p2326_p4 = scmp.lt.u32.totalorder %s2318_s0, %s2774_s8 }
 0x55f   : > { %p2320_p12 = pnand %p2319_p11, %p2488_p3 }
 0x560   : > { %p2325_p2 = por %p2324_p1, %p2323_p0 }
 0x561   : > { %p2321_p13 = pneg %p2320_p12 }
 0x562   : > { %p2327_p5 = por %p2326_p4, %p2325_p2 }
 0x564   : > { %p2328_p6 = pnand %p2327_p5, %p2321_p13 }
 0x566   : > { %2331 = shalt.err (!%p2328_p6)
}
 0x567   : > { %s2402_s20 = smov 128   ;;  %s2403_s23 = smov 8  }
 0x568   : > { %2130 = dma.vmem_to_hbm [thread:$0]  (%p2488_p3), %s2777_s13, 2048, %s2774_s8, %s2781_s15, %s2402_s20, %s2402_s20, %s2403_s23  }
 0x569 PF: > { %p2136_p7 = scmp.ge.s32.totalorder %s2398_s28, 2  ;;  %s1642_s26 = sand.u32 1, %s2370_s21  }
 0x56a   : > { %s1643_s24 = scalar_lea.sflag [#allocation4], %s1642_s26 }
 0x56b   : > { %p2133_p8 = pnand %p2136_p7, %p2498_p9 }
 0x56d   : > { %2365 = dma.done.wait (!%p2133_p8), %s1643_s24, 2048  }
 0x56e   : > { %2367 = vsyncadd (!%p2133_p8), %s1643_s24, 4294965248  ;;  %s19_s28 = sadd.s32 1, %s2398_s28   ;;  %s2856_s27 = sld [smem:[#allocation6_spill]] }
 0x56f   : > { %p16_p10 = scmp.ge.s32.totalorder %s19_s28, 10   ;;  %s2857_s23 = sld [smem:[#allocation11_spill]] }
 0x570   : > { %s2858_s24 = sld [smem:[#allocation7_spill]]  ;;  %s2859_s25 = sld [smem:[#allocation8_spill]] }
 0x571   : > { %s2860_s26 = sld [smem:[#allocation9_spill]]  ;;  %s2861_s9 = sld [smem:[#allocation10_spill]] }
 0x572   : > { %s2862_s21 = smov %s2374_s22  ;;  %18 = sbr.rel (!%p16_p10) target bundleno = 7 (0x7), region = 99 }
 0x574   : > { %s2863_s22 = smov %s2856_s27 }
 0x577   : > { %s2864_s27 = smov %s2861_s9 }
 0x579   :  { %1648 = vsyncpa [#allocation4], 1 }
 0x57a   :  { %1650 = vsyncpa [#allocation4 + $0x1], 1 }

</bundles_post_ra>
